<compile_context>
chip_gen: v7x
topology: tpu7x:2x2x1
jax: 0.10.0
libtpu: 0.0.40
codegen_flags: <defaults>
</compile_context>

<pallas_src>
import jax
import jax.numpy as jnp
from jax.experimental import pallas as pl
from jax.experimental.pallas import tpu as pltpu


def _round_up(x, m):
    return ((x + m - 1) // m) * m


# ---------------------------------------------------------------------------
# Pallas kernel: one lane-dense matmul + bias for the whole fused layer.
#   p_ref : (tm, Kd)         bf16  im2col patches tile (largest kernel's taps)
#   w_ref : (Kd, C_out_pad)  bf16  all scales' weights fused + zero padded
#   b_ref : (1,  C_out_pad)  f32   fused bias (zero padded)
#   o_ref : (tm, C_out_pad)  f32
# ---------------------------------------------------------------------------
def _fused_matmul_bias_kernel(p_ref, w_ref, b_ref, o_ref):
    acc = jnp.dot(p_ref[...], w_ref[...], preferred_element_type=jnp.float32)
    o_ref[...] = (acc + b_ref[...]).astype(o_ref.dtype)


# ---------------------------------------------------------------------------
# CrossEmbedLayer (JAX/Pallas port of the PyTorch module)
# ---------------------------------------------------------------------------
class CrossEmbedLayerPallas:
    def __init__(self, dim_in, dim_out, kernel_sizes, stride=2, key=None,
                 compute_dtype=jnp.bfloat16):
        kernel_sizes = sorted(kernel_sizes)
        num_scales = len(kernel_sizes)
        dim_scales = [int(dim_out / 2 ** i) for i in range(1, num_scales)]
        dim_scales = [*dim_scales, dim_out - sum(dim_scales)]

        self.dim_in = dim_in
        self.dim_out = dim_out
        self.stride = stride
        self.compute_dtype = compute_dtype

        # Per-scale params (PyTorch Conv2d default init); kept for the reference.
        key = jax.random.PRNGKey(0) if key is None else key
        self.per_scale = []  # (kernel, padding, w_hwio, bias)
        for kernel, dim_scale in zip(kernel_sizes, dim_scales):
            key, wk, bk = jax.random.split(key, 3)
            fan_in = dim_in * kernel * kernel
            bound = 1.0 / (fan_in ** 0.5)
            w = jax.random.uniform(wk, (kernel, kernel, dim_in, dim_scale),
                                   jnp.float32, -bound, bound)
            b = jax.random.uniform(bk, (dim_scale,), jnp.float32, -bound, bound)
            padding = (kernel - stride) // 2
            self.per_scale.append((kernel, padding, w, b))

        # --- Fuse all scales into one conv over the largest kernel's taps ---
        self.k_max = kernel_sizes[-1]
        self.pad_max = (self.k_max - stride) // 2
        self.c_out_pad = _round_up(dim_out, 128)          # lane-dense output
        self.kd = self.k_max * self.k_max * dim_in

        w_fused = jnp.zeros((self.k_max, self.k_max, dim_in, self.c_out_pad),
                            jnp.float32)
        b_fused = jnp.zeros((self.c_out_pad,), jnp.float32)
        ch = 0
        for (kernel, padding, w, b) in self.per_scale:
            off = self.pad_max - padding   # tap offset of this scale inside k_max
            w_fused = w_fused.at[off:off + kernel, off:off + kernel, :,
                                 ch:ch + w.shape[-1]].set(w)
            b_fused = b_fused.at[ch:ch + b.shape[0]].set(b)
            ch += w.shape[-1]
        # (ki, kj, c_in) fastest-varying c_in -> matches im2col column ordering.
        self.w_fused = w_fused.reshape(self.kd, self.c_out_pad).astype(compute_dtype)
        self.b_fused = b_fused.reshape(1, self.c_out_pad)  # keep f32 for the add

    # ------------------------------------------------------------------ NHWC
    def forward_nhwc(self, x):
        N, H, W, C_in = x.shape
        s, K, P = self.stride, self.k_max, self.pad_max
        H_out = (H + 2 * P - K) // s + 1
        W_out = (W + 2 * P - K) // s + 1

        # Every scale must produce the same spatial size (otherwise the PyTorch
        # module itself fails at torch.cat).
        for (kernel, padding, _, _) in self.per_scale:
            ho = (H + 2 * padding - kernel) // s + 1
            wo = (W + 2 * padding - kernel) // s + 1
            if (ho, wo) != (H_out, W_out):
                raise ValueError(
                    "kernel_sizes/stride combination yields mismatched spatial "
                    "outputs across scales; channel concat is ill-defined.")

        # Single im2col for the largest kernel (shared by all fused scales).
        xp = jnp.pad(x, ((0, 0), (P, P), (P, P), (0, 0)))
        patches = []
        for ki in range(K):
            for kj in range(K):
                sl = jax.lax.slice(
                    xp,
                    (0, ki, kj, 0),
                    (N, ki + (H_out - 1) * s + 1, kj + (W_out - 1) * s + 1, C_in),
                    (1, s, s, 1),
                )  # (N, H_out, W_out, C_in)
                patches.append(sl)
        patches = jnp.concatenate(patches, axis=-1).astype(self.compute_dtype)

        M = N * H_out * W_out
        p2 = patches.reshape(M, self.kd)

        # Row tiling: multiple of 8, capped at 256; pad (no divisibility assert).
        tm = min(256, _round_up(M, 8))
        M_pad = _round_up(M, tm)
        if M_pad != M:
            p2 = jnp.pad(p2, ((0, M_pad - M), (0, 0)))
        grid = (M_pad // tm,)

        itemsize = jnp.dtype(self.compute_dtype).itemsize
        cost = pl.CostEstimate(
            flops=2 * M_pad * self.kd * self.c_out_pad,
            transcendentals=0,
            bytes_accessed=(M_pad * self.kd * itemsize
                            + self.kd * self.c_out_pad * itemsize
                            + self.c_out_pad * 4
                            + M_pad * self.c_out_pad * 4),
        )

        out = pl.pallas_call(
            _fused_matmul_bias_kernel,
            out_shape=jax.ShapeDtypeStruct((M_pad, self.c_out_pad), jnp.float32),
            grid_spec=pltpu.PrefetchScalarGridSpec(
                num_scalar_prefetch=0,
                grid=grid,
                in_specs=[
                    pl.BlockSpec((tm, self.kd), lambda i: (i, 0)),
                    pl.BlockSpec((self.kd, self.c_out_pad), lambda i: (0, 0)),
                    pl.BlockSpec((1, self.c_out_pad), lambda i: (0, 0)),
                ],
                out_specs=pl.BlockSpec((tm, self.c_out_pad), lambda i: (i, 0)),
            ),
            compiler_params=pltpu.CompilerParams(
                dimension_semantics=("parallel",)),
            cost_estimate=cost,
        )(p2, self.w_fused, self.b_fused)

        out = out[:M, :self.dim_out].reshape(N, H_out, W_out, self.dim_out)
        return out

    # ------------------------------------------------------------------ NCHW
    def __call__(self, x_nchw):
        # NCHW in/out only for parity with the PyTorch module; the whole core
        # path is NHWC (use forward_nhwc directly to avoid both transposes).
        x = jnp.transpose(x_nchw, (0, 2, 3, 1))
        y = self.forward_nhwc(x)
        return jnp.transpose(y, (0, 3, 1, 2))


# ---------------------------------------------------------------------------
# Reference (pure JAX, f32) for a correctness check.
# ---------------------------------------------------------------------------
def _reference_forward(layer, x_nchw):
    outs = []
    for (kernel, padding, w, b) in layer.per_scale:
        w_oihw = jnp.transpose(w, (3, 2, 0, 1))
        y = jax.lax.conv_general_dilated(
            x_nchw, w_oihw,
            window_strides=(layer.stride, layer.stride),
            padding=[(padding, padding), (padding, padding)],
            dimension_numbers=("NCHW", "OIHW", "NCHW"),
        )
        outs.append(y + b[None, :, None, None])
    return jnp.concatenate(outs, axis=1)


if __name__ == "__main__":
    # Small config consistent with the module: dim_in=4, dim_out=8,
    # kernel_sizes=(2, 4), stride=2  ->  dim_scales = [4, 4].
    dim_in, dim_out = 4, 8
    kernel_sizes = (2, 4)
    stride = 2

    layer = CrossEmbedLayerPallas(dim_in, dim_out, kernel_sizes, stride=stride,
                                  key=jax.random.PRNGKey(1))

    x = jax.random.normal(jax.random.PRNGKey(0), (2, dim_in, 16, 16), jnp.float32)

    out = jax.block_until_ready(layer(x))
    ref = jax.block_until_ready(_reference_forward(layer, x))

    assert out.shape == (2, dim_out, 8, 8), out.shape
    max_err = float(jnp.max(jnp.abs(out - ref)))
    # bf16 operands with f32 accumulation -> compare against the f32 reference
    # with a tolerance that comfortably covers bf16 input rounding.
    assert max_err < 5e-2, max_err

    print("KERNEL_OK")
</pallas_src>

<mosaic_0001>
module attributes {stable_mosaic.version = 11 : i64} {
  func.func @_fused_matmul_bias_kernel(%arg0: i32, %arg1: memref<128x64xbf16, #tpu.memory_space<vmem>>, %arg2: memref<64x128xbf16, #tpu.memory_space<vmem>>, %arg3: memref<1x128xf32, #tpu.memory_space<vmem>>, %arg4: memref<128x128xf32, #tpu.memory_space<vmem>>) attributes {dimension_semantics = [#tpu.dimension_semantics<parallel>], iteration_bounds = array<i64: 1>, scalar_prefetch = 0 : i64, scratch_operands = 0 : i64, tpu.core_type = #tpu.core_type<tc>, window_params = [{transform_indices = @transform_0, window_bounds = array<i64: 128, 64>}, {pipeline_mode = #tpu.pipeline_mode<synchronous>, transform_indices = @transform_1, window_bounds = array<i64: 64, 128>}, {pipeline_mode = #tpu.pipeline_mode<synchronous>, transform_indices = @transform_2, window_bounds = array<i64: 1, 128>}, {transform_indices = @transform_3, window_bounds = array<i64: 128, 128>}]} {
    %c0 = arith.constant 0 : index
    %c0_0 = arith.constant 0 : index
    %0 = vector.load %arg1[%c0, %c0_0] : memref<128x64xbf16, #tpu.memory_space<vmem>>, vector<128x64xbf16>
    %c0_1 = arith.constant 0 : index
    %c0_2 = arith.constant 0 : index
    %1 = vector.load %arg2[%c0_1, %c0_2] : memref<64x128xbf16, #tpu.memory_space<vmem>>, vector<64x128xbf16>
    %cst = arith.constant dense<0.000000e+00> : vector<128x128xf32>
    %2 = tpu.matmul %0, %1, %cst {dimension_numbers = #tpu.dot_dimension_numbers<[1], [0], [0], [1], [0, 0, 1, 1], [], []>} : vector<128x64xbf16>, vector<64x128xbf16>, vector<128x128xf32> -> vector<128x128xf32>
    %c0_3 = arith.constant 0 : index
    %c0_4 = arith.constant 0 : index
    %3 = vector.load %arg3[%c0_3, %c0_4] : memref<1x128xf32, #tpu.memory_space<vmem>>, vector<1x128xf32>
    %4 = vector.broadcast %3 : vector<1x128xf32> to vector<128x128xf32>
    %5 = arith.addf %2, %4 : vector<128x128xf32>
    %c0_5 = arith.constant 0 : index
    %c0_6 = arith.constant 0 : index
    %6 = vector.load %arg4[%c0_5, %c0_6] : memref<128x128xf32, #tpu.memory_space<vmem>>, vector<128x128xf32>
    tpu.vector_store %arg4[%c0_5, %c0_6], %5 {strides = array<i32>} : memref<128x128xf32, #tpu.memory_space<vmem>>, vector<128x128xf32>,
    return
  }
  func.func @transform_0(%arg0: i32) -> (i32, i32) {
    %c0_i32 = arith.constant 0 : i32
    %c0_i32_0 = arith.constant 0 : i32
    return %arg0, %c0_i32 : i32, i32
  }
  func.func @transform_1(%arg0: i32) -> (i32, i32) {
    %c0_i32 = arith.constant 0 : i32
    %c0_i32_0 = arith.constant 0 : i32
    %c0_i32_1 = arith.constant 0 : i32
    return %c0_i32, %c0_i32_0 : i32, i32
  }
  func.func @transform_2(%arg0: i32) -> (i32, i32) {
    %c0_i32 = arith.constant 0 : i32
    %c0_i32_0 = arith.constant 0 : i32
    %c0_i32_1 = arith.constant 0 : i32
    return %c0_i32, %c0_i32_0 : i32, i32
  }
  func.func @transform_3(%arg0: i32) -> (i32, i32) {
    %c0_i32 = arith.constant 0 : i32
    %c0_i32_0 = arith.constant 0 : i32
    return %arg0, %c0_i32 : i32, i32
  }
}

</mosaic_0001>

<bundles_post_ra>
// kernel: tpu_custom_call.1
= control target key start
LH: loop header
LB: loop body
LE: loop exit
PB: predicated region body
PF: predicated region fallthrough
CT: control target
= control target key end

     0   :  { %vm111_vm0 = vcmask 523264   ;;  %s451_s0 = inlined_call_operand.vmem [shape: bf16[128,64], index: 0, kind: input, shape index: {}]   ;;  %s452_s1 = inlined_call_operand.vmem [shape: bf16[64,128], index: 1, kind: input, shape index: {}]   ;;  %s453_s2 = inlined_call_operand.vmem [shape: f32[1,128], index: 2, kind: input, shape index: {}]   ;;  %s454_s3 = inlined_call_operand.hbm [shape: f32[128,128], index: 3, kind: output, shape index: {}]  }
   0x1   :  { %v333_v0 = vld [vmem:[%s452_s1] sm:$0xff]   ;;  %v334_v1 = vld [vmem:[%s452_s1 + $0x8] sm:$0xff]   ;;  %v335_v2 = vld [vmem:[%s452_s1 + $0x10] sm:$0xff]  }
   0x2   :  { %298 = vmatprep.subr.bf16.mxu0 %v333_v0  ;;  %322 = vmatprep.subr.bf16.mxu1 %v333_v0  ;;  %v337_v3 = vld [vmem:[%s451_s0] sm:$0xff]   ;;  %v336_v5 = vld [vmem:[%s452_s1 + $0x18] sm:$0xff]  }
   0x3   :  { %299 = vmatpush3.bf16.msra.mxu0 %v333_v0  ;;  %326 = vmatpush3.bf16.msra.mxu1 %v333_v0  ;;  %v338_v4 = vld [vmem:[%s451_s0 + $0x20] sm:$0xff]  }
   0x4   :  { %300 = vmatprep.subr.bf16.mxu0 %v334_v1  ;;  %323 = vmatprep.subr.bf16.mxu1 %v334_v1 }
   0x5   :  { %306 = vmatprep.mubr.msk.bf16.mxu0 %vm111_vm0, %v337_v3  ;;  %314 = vmatprep.mubr.msk.bf16.mxu1 %vm111_vm0, %v338_v4 }
   0x7   :  { %301 = vmatpush3.bf16.msra.mxu0 %v334_v1  ;;  %327 = vmatpush3.bf16.msra.mxu1 %v334_v1 }
   0x8   :  { %302 = vmatprep.subr.bf16.mxu0 %v335_v2  ;;  %324 = vmatprep.subr.bf16.mxu1 %v335_v2 }
   0xb   :  { %303 = vmatpush3.bf16.msra.mxu0 %v335_v2  ;;  %328 = vmatpush3.bf16.msra.mxu1 %v335_v2 }
   0xc   :  { %304 = vmatprep.subr.bf16.mxu0 %v336_v5  ;;  %325 = vmatprep.subr.bf16.mxu1 %v336_v5 }
   0xd   :  { %8 = vsyncpa [#allocation3], 0  ;;  %v339_v6 = vld [vmem:[%s451_s0 + $0x8] sm:$0xff]   ;;  %v341_v8 = vld [vmem:[%s451_s0 + $0x10] sm:$0xff]  }
   0xe   :  { %v340_v7 = vld [vmem:[%s451_s0 + $0x28] sm:$0xff]   ;;  %v342_v9 = vld [vmem:[%s451_s0 + $0x30] sm:$0xff]   ;;  %v343_v10 = vld [vmem:[%s451_s0 + $0x18] sm:$0xff]  }
   0xf   :  { %305 = vmatpush3.bf16.msra.mxu0 %v336_v5  ;;  %329 = vmatpush3.bf16.msra.mxu1 %v336_v5  ;;  %v344_v11 = vld [vmem:[%s451_s0 + $0x38] sm:$0xff]   ;;  %v265_v12 = vld [vmem:[%s453_s2] ss:$0 sm:$0xff]  ;;  %s369_s0 = smov [#allocation2]  }
  0x10   :  { %s254_s2 = sshll.u32 %s369_s0, 4  ;;  %s255_s2 = int_to_ptr.vmem [resolvable:$true] %s254_s2 }
  0x11   :  { %s345_s10 = scalar_lea.vmem %s255_s2, 2048  ;;  %p350_p1 = scmp.lt.s32.totalorder %s255_s2, %s255_s2 }
  0x12   :  { %307 = vmatmul.mubr.msk.bf16.vlgmr.msra.gmra.mrb[0].mxu0 %vm111_vm0, %v339_v6  ;;  %315 = vmatmul.mubr.msk.bf16.vlgmr.msra.gmra.mrb[0].mxu1 %vm111_vm0, %v340_v7  ;;  %p346_p0 = scmp.ne.s32.totalorder %s255_s2, %s345_s10  ;;  %p351_p2 = scmp.lt.s32.totalorder %s345_s10, %s345_s10 }
  0x13   :  { %310 = vmatprep.mubr.msk.bf16.mxu0 %vm111_vm0, %v341_v8  ;;  %318 = vmatprep.mubr.msk.bf16.mxu1 %vm111_vm0, %v342_v9 }
  0x14   :  { %p352_p3 = por %p351_p2, %p350_p1 }
  0x16   :  { %p353_p4 = pnand %p352_p3, %p346_p0 }
  0x1a   :  { %311 = vmatmul.mubr.msk.bf16.gmra.mrb[4].mxu0 %vm111_vm0, %v343_v10  ;;  %319 = vmatmul.mubr.msk.bf16.gmra.mrb[4].mxu1 %vm111_vm0, %v344_v11 }
  0xe5   :  { %v308_v13 = vpop.f32.mrb[0].mxu0  ;;  %v316_v14 = vpop.f32.mrb[0].mxu1 }
  0xe6   :  { %v179_v15 = vadd.f32 %v308_v13, %v265_v12  ;;  %v211_v16 = vadd.f32 %v316_v14, %v265_v12  ;;  %v170_v17 = vpop.f32.mrb[1].mxu0  ;;  %v202_v18 = vpop.f32.mrb[1].mxu1 }
  0xe7   :  { %v171_v19 = vadd.f32 %v265_v12, %v170_v17  ;;  %v203_v20 = vadd.f32 %v265_v12, %v202_v18  ;;  %v309_v21 = vpop.f32.mrb[2].mxu0  ;;  %v317_v22 = vpop.f32.mrb[2].mxu1 }
  0xe8   :  { %235 = vst [vmem:[#allocation2 + $0x10] sm:$0xff] %v179_v15  ;;  %243 = vst [vmem:[#allocation2 + $0x50] sm:$0xff] %v211_v16  ;;  %v182_v23 = vadd.f32 %v309_v21, %v265_v12  ;;  %v214_v24 = vadd.f32 %v317_v22, %v265_v12  ;;  %v173_v25 = vpop.f32.mrb[3].mxu0  ;;  %v205_v26 = vpop.f32.mrb[3].mxu1 }
  0xe9   :  { %233 = vst [vmem:[#allocation2] sm:$0xff] %v171_v19  ;;  %241 = vst [vmem:[#allocation2 + $0x40] sm:$0xff] %v203_v20  ;;  %v174_v27 = vadd.f32 %v265_v12, %v173_v25  ;;  %v206_v28 = vadd.f32 %v265_v12, %v205_v26 }
  0xea   :  { %236 = vst [vmem:[#allocation2 + $0x18] sm:$0xff] %v182_v23  ;;  %244 = vst [vmem:[#allocation2 + $0x58] sm:$0xff] %v214_v24 }
  0xeb   :  { %234 = vst [vmem:[#allocation2 + $0x8] sm:$0xff] %v174_v27  ;;  %242 = vst [vmem:[#allocation2 + $0x48] sm:$0xff] %v206_v28 }
  0xed   :  { %v312_v29 = vpop.f32.mrb[4].mxu0  ;;  %v320_v30 = vpop.f32.mrb[4].mxu1 }
  0xee   :  { %v195_v31 = vadd.f32 %v312_v29, %v265_v12  ;;  %v227_v32 = vadd.f32 %v320_v30, %v265_v12  ;;  %v186_v33 = vpop.f32.mrb[5].mxu0  ;;  %v218_v34 = vpop.f32.mrb[5].mxu1 }
  0xef   :  { %v187_v35 = vadd.f32 %v265_v12, %v186_v33  ;;  %v219_v36 = vadd.f32 %v265_v12, %v218_v34  ;;  %v313_v37 = vpop.f32.mrb[6].mxu0  ;;  %v321_v38 = vpop.f32.mrb[6].mxu1 }
  0xf0   :  { %239 = vst [vmem:[#allocation2 + $0x30] sm:$0xff] %v195_v31  ;;  %247 = vst [vmem:[#allocation2 + $0x70] sm:$0xff] %v227_v32  ;;  %v198_v39 = vadd.f32 %v313_v37, %v265_v12  ;;  %v230_v40 = vadd.f32 %v321_v38, %v265_v12  ;;  %v189_v41 = vpop.f32.mrb[7].mxu0  ;;  %v221_v42 = vpop.f32.mrb[7].mxu1 }
  0xf1   :  { %237 = vst [vmem:[#allocation2 + $0x20] sm:$0xff] %v187_v35  ;;  %245 = vst [vmem:[#allocation2 + $0x60] sm:$0xff] %v219_v36  ;;  %v190_v43 = vadd.f32 %v265_v12, %v189_v41  ;;  %v222_v44 = vadd.f32 %v265_v12, %v221_v42 }
  0xf2   :  { %240 = vst [vmem:[#allocation2 + $0x38] sm:$0xff] %v198_v39  ;;  %248 = vst [vmem:[#allocation2 + $0x78] sm:$0xff] %v230_v40 }
  0xf3   :  { %238 = vst [vmem:[#allocation2 + $0x28] sm:$0xff] %v190_v43  ;;  %246 = vst [vmem:[#allocation2 + $0x68] sm:$0xff] %v222_v44 }
  0xf4   :  { %356 = shalt.err (!%p353_p4)
}
  0xf5   :  { %s357_s13 = scalar_lea.hbm %s454_s3, 2048 }
  0xf6   :  { %p358_p5 = scmp.ne.s32.totalorder %s454_s3, %s357_s13  ;;  %p361_p6 = scmp.lt.u32.totalorder %s357_s13, %s454_s3 }
  0xf8   :  { %p363_p7 = pnand %p361_p6, %p358_p5 }
  0xfa   :  { %366 = shalt.err (!%p363_p7)
}
  0xfb   :  { %s370_s18 = smov 128   ;;  %s371_s19 = smov 8  }
  0xfc   :  { %260 = dma.vmem_to_hbm [thread:$0]  %s255_s2, 2048, %s454_s3, [#allocation3], %s370_s18, %s370_s18, %s371_s19  }
  0xfd   :  { %367 = dma.done.wait [#allocation3], 2048  }
  0xfe   :  { %368 = vsyncadd [#allocation3], 4294965248 }
  0xff   :  { %264 = vsyncpa [#allocation3], 1 }

</bundles_post_ra>
